<compile_context>
chip_gen: v7x
topology: tpu7x:2x2x1
jax: 0.10.0
libtpu: 0.0.40
codegen_flags: <defaults>
</compile_context>

<pallas_src>
import functools

import jax
import jax.numpy as jnp
from jax.experimental import pallas as pl
from jax.experimental.pallas import tpu as pltpu


def _choose_tile_d(D, HW, budget_bytes=1 << 20):
    """Largest D-tile (multiple of 8, or the full D) within a VMEM budget."""
    planes = max(1, budget_bytes // (HW * 4))
    td = max((planes // 8) * 8, 8)
    return D if td >= D else td


def _grad_loss_kernel(x_ref, odx_ref, ody_ref, odz_ref, prev_ref,
                      *, D, H, W, tD, HW):
    j = pl.program_id(1)  # D-tile index (the "arbitrary" / reduction axis)

    # Output blocks depend only on the parallel volume axis -> resident
    # accumulators across the D-tile axis; zero them on its first step.
    @pl.when(j == 0)
    def _init():
        odx_ref[...] = jnp.zeros_like(odx_ref)
        ody_ref[...] = jnp.zeros_like(ody_ref)
        odz_ref[...] = jnp.zeros_like(odz_ref)

    x = x_ref[0].astype(jnp.float32)                           # (tD, HW)

    k_ids = jax.lax.broadcasted_iota(jnp.int32, (tD, HW), 0)   # plane-in-tile
    f_ids = jax.lax.broadcasted_iota(jnp.int32, (tD, HW), 1)   # fused h*W + w
    g_ids = k_ids + j * tD                                     # global plane
    plane_ok = g_ids < D            # mask padded planes of a ragged edge tile

    # --- W-direction (dz): neighbour at fused index f+1 (lane roll). ---------
    dz = pltpu.roll(x, shift=HW - 1, axis=1) - x
    dz = jnp.where(jnp.logical_and(plane_ok, (f_ids % W) != (W - 1)), dz, 0.0)
    odz_ref[...] += jnp.sum(dz * dz, axis=0, keepdims=True).reshape(1, 1, HW)

    # --- H-direction (dy): neighbour at fused index f+W (lane roll by W). ----
    dy = pltpu.roll(x, shift=HW - W, axis=1) - x
    dy = jnp.where(jnp.logical_and(plane_ok, f_ids < (H - 1) * W), dy, 0.0)
    ody_ref[...] += jnp.sum(dy * dy, axis=0, keepdims=True).reshape(1, 1, HW)

    # --- D-direction (dx): previous plane via sublane roll; plane 0 of the
    # tile comes from the carried scratch (last plane of the previous tile). --
    prev = pltpu.roll(x, shift=1, axis=0)                      # prev[k] = x[k-1]
    prev = jnp.where(k_ids == 0, prev_ref[...], prev)
    dx = x - prev
    dx = jnp.where(jnp.logical_and(plane_ok, g_ids >= 1), dx, 0.0)
    odx_ref[...] += jnp.sum(dx * dx, axis=0, keepdims=True).reshape(1, 1, HW)

    # Carry this tile's last plane for the next D-tile of the same volume.
    prev_ref[...] = x[tD - 1:tD, :]


def gradient_loss(x, norm="L2", spacing=(1.0, 1.0, 1.0), normalize=True):
    """x: (N, 3, D, H, W) deformation field. Returns scalar f32 loss."""
    # TODO(synk): `norm`/`spacing`/`normalize` are dead in the reference forward
    # (it always squares and never applies spacing); kept for API fidelity.
    # TODO(synk): optionally keep x in bf16 in HBM (kernel already upcasts) to
    # halve HBM traffic in this memory-bound kernel.
    N, C, D, H, W = x.shape
    NC, HW = N * C, H * W
    x3 = x.reshape(NC, D, HW)       # fuse (H, W) onto the lane axis

    tD = _choose_tile_d(D, HW)
    GD = pl.cdiv(D, tD)

    kernel = functools.partial(_grad_loss_kernel, D=D, H=H, W=W, tD=tD, HW=HW)

    out_shape = tuple(jax.ShapeDtypeStruct((NC, 1, HW), jnp.float32)
                      for _ in range(3))
    out_specs = [pl.BlockSpec((1, 1, HW), lambda i, j: (i, 0, 0))
                 for _ in range(3)]

    # Memory-bound (~2 flops/byte); advisory estimate for the XLA scheduler.
    cost = pl.CostEstimate(flops=9 * NC * D * HW, transcendentals=0,
                           bytes_accessed=4 * NC * D * HW + 3 * 4 * NC * HW)

    odx, ody, odz = pl.pallas_call(
        kernel,
        out_shape=out_shape,
        grid_spec=pltpu.PrefetchScalarGridSpec(
            num_scalar_prefetch=0,
            grid=(NC, GD),
            in_specs=[pl.BlockSpec((1, tD, HW), lambda i, j: (i, j, 0))],
            out_specs=out_specs,
            scratch_shapes=[pltpu.VMEM((1, HW), jnp.float32)],
        ),
        compiler_params=pltpu.CompilerParams(
            dimension_semantics=("parallel", "arbitrary")),
        cost_estimate=cost,
    )(x3)

    mean_dx = jnp.sum(odx) / (NC * (D - 1) * H * W)
    mean_dy = jnp.sum(ody) / (NC * D * (H - 1) * W)
    mean_dz = jnp.sum(odz) / (NC * D * H * (W - 1))
    return (mean_dx + mean_dy + mean_dz) / 3.0


if __name__ == "__main__":
    key = jax.random.PRNGKey(0)
    N, C, D, H, W = 2, 3, 8, 16, 16          # Nx3xDxHxW deformation field
    x = jax.random.normal(key, (N, C, D, H, W), dtype=jnp.float32)

    loss = jax.block_until_ready(gradient_loss(x))

    # Pure-JAX reference (mirrors the PyTorch forward exactly).
    dx = jnp.abs(x[:, :, 1:, :, :] - x[:, :, :-1, :, :])
    dy = jnp.abs(x[:, :, :, 1:, :] - x[:, :, :, :-1, :])
    dz = jnp.abs(x[:, :, :, :, 1:] - x[:, :, :, :, :-1])
    ref = (jnp.mean(dx * dx) + jnp.mean(dy * dy) + jnp.mean(dz * dz)) / 3.0

    assert jnp.allclose(loss, ref, rtol=1e-5, atol=1e-6), (loss, ref)
    print("KERNEL_OK")
</pallas_src>

<mosaic_0001>
module attributes {stable_mosaic.version = 11 : i64} {
  func.func @_grad_loss_kernel(%arg0: i32, %arg1: i32, %arg2: memref<1x8x256xf32, #tpu.memory_space<vmem>>, %arg3: memref<1x1x256xf32, #tpu.memory_space<vmem>>, %arg4: memref<1x1x256xf32, #tpu.memory_space<vmem>>, %arg5: memref<1x1x256xf32, #tpu.memory_space<vmem>>, %arg6: memref<1x256xf32, #tpu.memory_space<vmem>>) attributes {dimension_semantics = [#tpu.dimension_semantics<parallel>, #tpu.dimension_semantics<arbitrary>], iteration_bounds = array<i64: 6, 1>, scalar_prefetch = 0 : i64, scratch_operands = 1 : i64, tpu.core_type = #tpu.core_type<tc>, window_params = [{transform_indices = @transform_0, window_bounds = array<i64: 1, 8, 256>}, {transform_indices = @transform_1, window_bounds = array<i64: 1, 1, 256>}, {transform_indices = @transform_2, window_bounds = array<i64: 1, 1, 256>}, {transform_indices = @transform_3, window_bounds = array<i64: 1, 1, 256>}]} {
    %c0_i32 = arith.constant 0 : i32
    %0 = arith.cmpi eq, %arg1, %c0_i32 : i32
    %1 = arith.extui %0 : i1 to i32
    %c0_i32_0 = arith.constant 0 : i32
    %2 = arith.cmpi ne, %1, %c0_i32_0 : i32
    scf.if %2 {
      %cst_39 = arith.constant 0.000000e+00 : f32
      %78 = vector.broadcast %cst_39 : f32 to vector<1x1x256xf32>
      %c0_40 = arith.constant 0 : index
      %c0_41 = arith.constant 0 : index
      %c0_42 = arith.constant 0 : index
      %79 = vector.load %arg3[%c0_40, %c0_41, %c0_42] : memref<1x1x256xf32, #tpu.memory_space<vmem>>, vector<1x1x256xf32>
      tpu.vector_store %arg3[%c0_40, %c0_41, %c0_42], %78 {strides = array<i32>} : memref<1x1x256xf32, #tpu.memory_space<vmem>>, vector<1x1x256xf32>,
      %cst_43 = arith.constant 0.000000e+00 : f32
      %80 = vector.broadcast %cst_43 : f32 to vector<1x1x256xf32>
      %c0_44 = arith.constant 0 : index
      %c0_45 = arith.constant 0 : index
      %c0_46 = arith.constant 0 : index
      %81 = vector.load %arg4[%c0_44, %c0_45, %c0_46] : memref<1x1x256xf32, #tpu.memory_space<vmem>>, vector<1x1x256xf32>
      tpu.vector_store %arg4[%c0_44, %c0_45, %c0_46], %80 {strides = array<i32>} : memref<1x1x256xf32, #tpu.memory_space<vmem>>, vector<1x1x256xf32>,
      %cst_47 = arith.constant 0.000000e+00 : f32
      %82 = vector.broadcast %cst_47 : f32 to vector<1x1x256xf32>
      %c0_48 = arith.constant 0 : index
      %c0_49 = arith.constant 0 : index
      %c0_50 = arith.constant 0 : index
      %83 = vector.load %arg5[%c0_48, %c0_49, %c0_50] : memref<1x1x256xf32, #tpu.memory_space<vmem>>, vector<1x1x256xf32>
      tpu.vector_store %arg5[%c0_48, %c0_49, %c0_50], %82 {strides = array<i32>} : memref<1x1x256xf32, #tpu.memory_space<vmem>>, vector<1x1x256xf32>,
    } else {
    }
    %c0 = arith.constant 0 : index
    %c0_1 = arith.constant 0 : index
    %c0_2 = arith.constant 0 : index
    %3 = vector.load %arg2[%c0, %c0_1, %c0_2] : memref<1x8x256xf32, #tpu.memory_space<vmem>>, vector<1x8x256xf32>
    %4 = vector.shape_cast %3 : vector<1x8x256xf32> to vector<8x256xf32>
    %5 = tpu.iota {dimensions = array<i32: 0>} : vector<8x256xi32>
    %6 = tpu.iota {dimensions = array<i32: 1>} : vector<8x256xi32>
    %c8_i32 = arith.constant 8 : i32
    %7 = arith.muli %arg1, %c8_i32 : i32
    %8 = vector.broadcast %7 : i32 to vector<8x256xi32>
    %9 = arith.addi %5, %8 : vector<8x256xi32>
    %c8_i32_3 = arith.constant 8 : i32
    %10 = vector.broadcast %c8_i32_3 : i32 to vector<8x256xi32>
    %11 = arith.cmpi slt, %9, %10 : vector<8x256xi32>
    %c255_i32 = arith.constant 255 : i32
    %12 = tpu.dynamic_rotate %4 by %c255_i32 dim 1 : vector<8x256xf32>, i32 -> vector<8x256xf32>
    %13 = arith.subf %12, %4 : vector<8x256xf32>
    %c16_i32 = arith.constant 16 : i32
    %c0_i32_4 = arith.constant 0 : i32
    %14 = arith.cmpi eq, %c16_i32, %c0_i32_4 : i32
    %c1_i32 = arith.constant 1 : i32
    %15 = arith.select %14, %c1_i32, %c16_i32 : i32
    %16 = vector.broadcast %15 : i32 to vector<8x256xi32>
    %17 = arith.remsi %6, %16 : vector<8x256xi32>
    %c0_i32_5 = arith.constant 0 : i32
    %18 = vector.broadcast %c0_i32_5 : i32 to vector<8x256xi32>
    %19 = arith.cmpi ne, %17, %18 : vector<8x256xi32>
    %c0_i32_6 = arith.constant 0 : i32
    %20 = vector.broadcast %c0_i32_6 : i32 to vector<8x256xi32>
    %21 = arith.cmpi slt, %17, %20 : vector<8x256xi32>
    %c0_i32_7 = arith.constant 0 : i32
    %22 = arith.cmpi slt, %15, %c0_i32_7 : i32
    %23 = vector.broadcast %22 : i1 to vector<8x256xi1>
    %24 = vector.broadcast %23 : vector<8x256xi1> to vector<8x256xi1>
    %25 = arith.xori %21, %24 : vector<8x256xi1>
    %26 = arith.andi %25, %19 : vector<8x256xi1>
    %27 = vector.broadcast %15 : i32 to vector<8x256xi32>
    %28 = arith.addi %17, %27 : vector<8x256xi32>
    %29 = arith.select %26, %28, %17 : vector<8x256xi1>, vector<8x256xi32>
    %c15_i32 = arith.constant 15 : i32
    %30 = vector.broadcast %c15_i32 : i32 to vector<8x256xi32>
    %31 = arith.cmpi ne, %29, %30 : vector<8x256xi32>
    %32 = arith.andi %11, %31 : vector<8x256xi1>
    %cst = arith.constant 0.000000e+00 : f32
    %33 = vector.broadcast %cst : f32 to vector<8x256xf32>
    %34 = arith.select %32, %13, %33 : vector<8x256xi1>, vector<8x256xf32>
    %c0_8 = arith.constant 0 : index
    %c0_9 = arith.constant 0 : index
    %c0_10 = arith.constant 0 : index
    %35 = vector.load %arg5[%c0_8, %c0_9, %c0_10] : memref<1x1x256xf32, #tpu.memory_space<vmem>>, vector<1x1x256xf32>
    %36 = arith.mulf %34, %34 : vector<8x256xf32>
    %cst_11 = arith.constant dense<0.000000e+00> : vector<256xf32>
    %37 = vector.multi_reduction <add>, %36, %cst_11 [0] : vector<8x256xf32> to vector<256xf32>
    %38 = vector.shape_cast %37 : vector<256xf32> to vector<1x256xf32>
    %39 = vector.shape_cast %38 : vector<1x256xf32> to vector<1x1x256xf32>
    %40 = arith.addf %35, %39 : vector<1x1x256xf32>
    %c0_12 = arith.constant 0 : index
    %c0_13 = arith.constant 0 : index
    %c0_14 = arith.constant 0 : index
    %41 = vector.load %arg5[%c0_12, %c0_13, %c0_14] : memref<1x1x256xf32, #tpu.memory_space<vmem>>, vector<1x1x256xf32>
    tpu.vector_store %arg5[%c0_12, %c0_13, %c0_14], %40 {strides = array<i32>} : memref<1x1x256xf32, #tpu.memory_space<vmem>>, vector<1x1x256xf32>,
    %c240_i32 = arith.constant 240 : i32
    %42 = tpu.dynamic_rotate %4 by %c240_i32 dim 1 : vector<8x256xf32>, i32 -> vector<8x256xf32>
    %43 = arith.subf %42, %4 : vector<8x256xf32>
    %c240_i32_15 = arith.constant 240 : i32
    %44 = vector.broadcast %c240_i32_15 : i32 to vector<8x256xi32>
    %45 = arith.cmpi slt, %6, %44 : vector<8x256xi32>
    %46 = arith.andi %11, %45 : vector<8x256xi1>
    %cst_16 = arith.constant 0.000000e+00 : f32
    %47 = vector.broadcast %cst_16 : f32 to vector<8x256xf32>
    %48 = arith.select %46, %43, %47 : vector<8x256xi1>, vector<8x256xf32>
    %c0_17 = arith.constant 0 : index
    %c0_18 = arith.constant 0 : index
    %c0_19 = arith.constant 0 : index
    %49 = vector.load %arg4[%c0_17, %c0_18, %c0_19] : memref<1x1x256xf32, #tpu.memory_space<vmem>>, vector<1x1x256xf32>
    %50 = arith.mulf %48, %48 : vector<8x256xf32>
    %cst_20 = arith.constant dense<0.000000e+00> : vector<256xf32>
    %51 = vector.multi_reduction <add>, %50, %cst_20 [0] : vector<8x256xf32> to vector<256xf32>
    %52 = vector.shape_cast %51 : vector<256xf32> to vector<1x256xf32>
    %53 = vector.shape_cast %52 : vector<1x256xf32> to vector<1x1x256xf32>
    %54 = arith.addf %49, %53 : vector<1x1x256xf32>
    %c0_21 = arith.constant 0 : index
    %c0_22 = arith.constant 0 : index
    %c0_23 = arith.constant 0 : index
    %55 = vector.load %arg4[%c0_21, %c0_22, %c0_23] : memref<1x1x256xf32, #tpu.memory_space<vmem>>, vector<1x1x256xf32>
    tpu.vector_store %arg4[%c0_21, %c0_22, %c0_23], %54 {strides = array<i32>} : memref<1x1x256xf32, #tpu.memory_space<vmem>>, vector<1x1x256xf32>,
    %c1_i32_24 = arith.constant 1 : i32
    %56 = tpu.dynamic_rotate %4 by %c1_i32_24 dim 0 : vector<8x256xf32>, i32 -> vector<8x256xf32>
    %c0_i32_25 = arith.constant 0 : i32
    %57 = vector.broadcast %c0_i32_25 : i32 to vector<8x256xi32>
    %58 = arith.cmpi eq, %5, %57 : vector<8x256xi32>
    %c0_26 = arith.constant 0 : index
    %c0_27 = arith.constant 0 : index
    %59 = vector.load %arg6[%c0_26, %c0_27] : memref<1x256xf32, #tpu.memory_space<vmem>>, vector<1x256xf32>
    %60 = vector.shape_cast %59 : vector<1x256xf32> to vector<1x256xf32>
    %61 = vector.broadcast %60 : vector<1x256xf32> to vector<8x256xf32>
    %62 = arith.select %58, %61, %56 : vector<8x256xi1>, vector<8x256xf32>
    %63 = arith.subf %4, %62 : vector<8x256xf32>
    %c1_i32_28 = arith.constant 1 : i32
    %64 = vector.broadcast %c1_i32_28 : i32 to vector<8x256xi32>
    %65 = arith.cmpi sge, %9, %64 : vector<8x256xi32>
    %66 = arith.andi %11, %65 : vector<8x256xi1>
    %cst_29 = arith.constant 0.000000e+00 : f32
    %67 = vector.broadcast %cst_29 : f32 to vector<8x256xf32>
    %68 = arith.select %66, %63, %67 : vector<8x256xi1>, vector<8x256xf32>
    %c0_30 = arith.constant 0 : index
    %c0_31 = arith.constant 0 : index
    %c0_32 = arith.constant 0 : index
    %69 = vector.load %arg3[%c0_30, %c0_31, %c0_32] : memref<1x1x256xf32, #tpu.memory_space<vmem>>, vector<1x1x256xf32>
    %70 = arith.mulf %68, %68 : vector<8x256xf32>
    %cst_33 = arith.constant dense<0.000000e+00> : vector<256xf32>
    %71 = vector.multi_reduction <add>, %70, %cst_33 [0] : vector<8x256xf32> to vector<256xf32>
    %72 = vector.shape_cast %71 : vector<256xf32> to vector<1x256xf32>
    %73 = vector.shape_cast %72 : vector<1x256xf32> to vector<1x1x256xf32>
    %74 = arith.addf %69, %73 : vector<1x1x256xf32>
    %c0_34 = arith.constant 0 : index
    %c0_35 = arith.constant 0 : index
    %c0_36 = arith.constant 0 : index
    %75 = vector.load %arg3[%c0_34, %c0_35, %c0_36] : memref<1x1x256xf32, #tpu.memory_space<vmem>>, vector<1x1x256xf32>
    tpu.vector_store %arg3[%c0_34, %c0_35, %c0_36], %74 {strides = array<i32>} : memref<1x1x256xf32, #tpu.memory_space<vmem>>, vector<1x1x256xf32>,
    %76 = vector.extract_strided_slice %4 {offsets = [7, 0], sizes = [1, 256], strides = [1, 1]} : vector<8x256xf32> to vector<1x256xf32>
    %c0_37 = arith.constant 0 : index
    %c0_38 = arith.constant 0 : index
    %77 = vector.load %arg6[%c0_37, %c0_38] : memref<1x256xf32, #tpu.memory_space<vmem>>, vector<1x256xf32>
    tpu.vector_store %arg6[%c0_37, %c0_38], %76 {strides = array<i32>} : memref<1x256xf32, #tpu.memory_space<vmem>>, vector<1x256xf32>,
    return
  }
  func.func @transform_0(%arg0: i32, %arg1: i32) -> (i32, i32, i32) {
    %c0_i32 = arith.constant 0 : i32
    %c0_i32_0 = arith.constant 0 : i32
    return %arg0, %arg1, %c0_i32 : i32, i32, i32
  }
  func.func @transform_1(%arg0: i32, %arg1: i32) -> (i32, i32, i32) {
    %c0_i32 = arith.constant 0 : i32
    %c0_i32_0 = arith.constant 0 : i32
    %c0_i32_1 = arith.constant 0 : i32
    return %arg0, %c0_i32, %c0_i32_0 : i32, i32, i32
  }
  func.func @transform_2(%arg0: i32, %arg1: i32) -> (i32, i32, i32) {
    %c0_i32 = arith.constant 0 : i32
    %c0_i32_0 = arith.constant 0 : i32
    %c0_i32_1 = arith.constant 0 : i32
    return %arg0, %c0_i32, %c0_i32_0 : i32, i32, i32
  }
  func.func @transform_3(%arg0: i32, %arg1: i32) -> (i32, i32, i32) {
    %c0_i32 = arith.constant 0 : i32
    %c0_i32_0 = arith.constant 0 : i32
    %c0_i32_1 = arith.constant 0 : i32
    return %arg0, %c0_i32, %c0_i32_0 : i32, i32, i32
  }
}

</mosaic_0001>

<bundles_post_ra>
// kernel: tpu_custom_call.1
= control target key start
LH: loop header
LB: loop body
LE: loop exit
PB: predicated region body
PF: predicated region fallthrough
CT: control target
= control target key end

     0   :  { %9 = vsyncpa [#allocation4], 0  ;;  %s1257_s0 = inlined_call_operand.hbm [shape: f32[6,8,256], index: 0, kind: input, shape index: {}]   ;;  %s1258_s1 = inlined_call_operand.hbm [shape: f32[6,1,256], index: 1, kind: output, shape index: {0}]   ;;  %s1259_s2 = inlined_call_operand.hbm [shape: f32[6,1,256], index: 2, kind: output, shape index: {1}]   ;;  %s1260_s3 = inlined_call_operand.hbm [shape: f32[6,1,256], index: 3, kind: output, shape index: {2}]  }
   0x1   :  { %11 = vsyncpa [#allocation4 + $0x1], 0 }
   0x2   :  { %12 = vsyncpa [#allocation5], 0 }
   0x3   :  { %14 = vsyncpa [#allocation5 + $0x1], 0 }
   0x4   :  { %15 = vsyncpa [#allocation8], 0 }
   0x5   :  { %17 = vsyncpa [#allocation8 + $0x1], 0  ;;  %s951_s12 = smov 0   ;;  %s953_s13 = smov 0  }
   0x6   :  { %s955_s14 = smov 0   ;;  %s957_s15 = smov 0  }
   0x7   :  { %s959_s16 = smov 0   ;;  %s961_s17 = smov 0  }
   0x8 LB: > { %s982_s18 = sadd.s32 4294967295, %s921_s17   ;;  %s646_s19 = sadd.s32 4294967294, %s921_s17   ;;  %s921_s17 = sphi %s961_s17, %s23_s17   ;;  %s917_s16 = sphi %s959_s16, %s1277_s16   ;;  %s913_s15 = sphi %s957_s15, %s1276_s15   ;;  %s909_s14 = sphi %s955_s14, %s1275_s14   ;;  %s905_s13 = sphi %s953_s13, %s1274_s13   ;;  %s901_s12 = sphi %s951_s12, %s1273_s12  }
   0x9   : > { %s35_s20 = sadd.s32 1, %s917_s16  ;;  %s44_s21 = sadd.s32 1, %s909_s14 }
   0xa   : > { %p37_p0 = scmp.ge.s32.totalorder %s35_s20, 6  ;;  %p51_p1 = scmp.ne.s32.totalorder %s909_s14, %s905_s13 }
   0xb   : > { %p52_p2 = scmp.eq.s32.totalorder %s921_s17, 0  ;;  %p57_p3 = scmp.ne.s32.totalorder %s905_s13, %s901_s12 }
   0xc   : > { %s1279_s20 = smov (%p37_p0, %s35_s20), 0  ;;  %p58_p5 = scmp.eq.s32.totalorder %s982_s18, 0 }
   0xd   : > { %p994_p4 = por %p52_p2, %p51_p1  ;;  %s39_s23 = ssub.s32 %s917_s16, %s1279_s20 }
   0xe   : > { %p81_p6 = scmp.eq.s32.totalorder %s982_s18, 5  ;;  %p42_p7 = scmp.eq.s32.totalorder %s39_s23, 0 }
   0xf   : > { %p1002_p8 = por %p58_p5, %p57_p3  ;;  %p87_p10 = scmp.eq.s32.totalorder %s646_s19, 5 }
  0x10   : > { %p1006_p9 = por %p81_p6, %p51_p1  ;;  %p694_p12 = scmp.lt.s32.totalorder %s921_s17, 6 }
  0x11   : > { %s1013_s26 = scalar_select %p42_p7, %s909_s14, %s44_s21  }
  0x12   : > { %s1264_s25 = scalar_select %p1006_p9, 1, 0 }
  0x13   : > { %p1015_p11 = por %p87_p10, %p57_p3  ;;  %s159_s28 = sand.u32 1, %s909_s14  }
  0x14   : > { %s649_s29 = sshll.u32 %s159_s28, 4  ;;  %s668_s30 = sshll.u32 %s917_s16, 8 }
  0x15   : > { %s1265_s27 = scalar_select %p1015_p11, 1, 0 }
  0x16   : > { %s1025_s6 = scalar_lea.hbm %s1257_s0, %s668_s30  ;;  %s163_s7 = scalar_lea.vmem [#allocation3], %s649_s29 }
  0x17   : > { %s173_s8 = sshll.u32 %s163_s7, 4  ;;  %p1031_p13 = pnand %p694_p12, %p994_p4  ;;  %s1027_s8 = int_to_ptr.vmem [resolvable:$true] %s173_s8 }
  0x18   : > { %s160_s10 = scalar_lea.sflag [#allocation4], %s159_s28  ;;  %s749_s11 = scalar_lea.hbm %s1025_s6, 256 }
  0x19   : > { %p750_p2 = scmp.ne.s32.totalorder %s1025_s6, %s749_s11  ;;  %p751_p3 = pneg %p1031_p13 }
  0x1a   : > { %s754_s22 = scalar_lea.hbm %s1257_s0, 1536  ;;  %p755_p4 = scmp.lt.u32.totalorder %s1025_s6, %s1257_s0 }
  0x1b   : > { %p752_p5 = pnand %p751_p3, %p750_p2  ;;  %p756_p7 = scmp.lt.u32.totalorder %s754_s22, %s749_s11 }
  0x1c   : > { %p758_p12 = scmp.lt.u32.totalorder %s749_s11, %s1025_s6 }
  0x1d   : > { %p753_p6 = pneg %p752_p5  ;;  %p757_p10 = por %p756_p7, %p755_p4 }
  0x1f   : > { %p759_p0 = por %p758_p12, %p757_p10 }
  0x21   : > { %p760_p1 = pnand %p759_p0, %p753_p6 }
  0x23   : > { %763 = shalt.err (!%p760_p1)
}
  0x24   : > { %s764_s28 = scalar_lea.vmem %s1027_s8, 256  ;;  %s923_s4 = smov [#allocation3]  }
  0x25   : > { %p765_p2 = scmp.ne.s32.totalorder %s1027_s8, %s764_s28  ;;  %s769_s5 = sshll.u32 %s923_s4, 4  ;;  %s770_s5 = int_to_ptr.vmem [resolvable:$false] %s769_s5 }
  0x26   : > { %s771_s7 = scalar_lea.vmem %s770_s5, 512  ;;  %p772_p9 = scmp.lt.s32.totalorder %s1027_s8, %s770_s5 }
  0x27   : > { %p767_p5 = pnand %p765_p2, %p751_p3  ;;  %p773_p4 = scmp.lt.s32.totalorder %s771_s7, %s764_s28 }
  0x29   : > { %p768_p11 = pneg %p767_p5  ;;  %p774_p7 = por %p773_p4, %p772_p9 }
  0x2b   : > { %p775_p10 = pnand %p774_p7, %p768_p11 }
  0x2d   : > { %778 = shalt.err (!%p775_p10)
}
  0x2e   : > { %683 = dma.hbm_to_vmem [thread:$0]  (!%p1031_p13), %s1025_s6, 256, %s1027_s8, %s160_s10  }
  0x2f   : > { %p1267_p0 = scmp.lt.s32.totalorder %s921_s17, 7  ;;  %p1268_p1 = scmp.ge.s32.totalorder %s921_s17, 1 }
  0x31   : > { %p179_p3 = pnand %p1268_p1, %p1267_p0 }
  0x32   : > { %s1067_s11 = sand.u32 (!%p179_p3), 1, %s905_s13  }
  0x33   : > { %182 = sbr.rel (%p179_p3) target bundleno = 242 (0xf2), region = 24  ;;  %s653_s21 = sshll.u32 (!%p179_p3), %s1067_s11, 4 }
  0x34   : > { %s185_s23 = scalar_lea.sflag (!%p179_p3), [#allocation4], %s1067_s11  ;;  %s188_s22 = scalar_lea.vmem (!%p179_p3), [#allocation3], %s653_s21 }
  0x3a   : > { %888 = dma.done.wait (%p1002_p8), %s185_s23, 256  }
  0x3b   : > { %890 = vsyncadd (%p1002_p8), %s185_s23, 4294967040  ;;  %v225_v0 = vlaneseq  ;;  %v1076_v4 = vld [vmem:[%s188_s22] sm:$0xff]  ;;  %v1078_v5 = vld [vmem:[%s188_s22 + $0x8] sm:$0xff]  ;;  %v924_v6 = vmov 1966171168   ;;  %s925_s6 = smov 127  }
  0x3c   : > { %v301_v7 = vunpack.c.l.s4 %v924_v6  ;;  %v374_v8 = vld [vmem:[#allocation2] sm:$0x3]  ;;  %243 = vrot.lane.b32.xlu1 %v1076_v4, %s925_s6  ;;  %v371_v9 = vrot.slane %v1076_v4, 7  ;;  %s926_s24 = smov 112   ;;  %v372_v10 = vrot.slane %v1078_v5, 7  ;;  %s654_s8 = sshll.u32 %s1067_s11, 1  ;;  %v431_v21 = vcombine.high %v1076_v4, %v1078_v5 }
  0x3d   : > { %v235_v1 = vshrl.u32 %v225_v0, 7  ;;  %321 = vrot.lane.b32.xlu0 %v1076_v4, %s926_s24  ;;  %vm1090_vm2 = vcmp.lt.s32.totalorder %v225_v0, 256  ;;  %s1098_s9 = scalar_lea.vmem [#allocation7], %s654_s8  ;;  %v927_v23 = vmov 0.0   ;;  %s1103_s10 = scalar_lea.vmem [#allocation9], %s654_s8 }
  0x3e   : > { %v302_v13 = vunpack.c.0.s8 %v301_v7  ;;  %230 = vst.msk [vmem:[%s1098_s9] sm:$0x3] %vm1090_vm2, %v927_v23  ;;  %231 = vst.msk [vmem:[%s1103_s10] sm:$0x3] %vm1090_vm2, %v927_v23  ;;  %s206_s29 = scalar_lea.vmem [#allocation6], %s654_s8  ;;  %s1116_s30 = sshll.u32 %s913_s15, 5 }
  0x3f   : > { %v378_v2 = vsub.s32 0, %v235_v1  ;;  %v382_v3 = vsub.s32 1, %v235_v1  ;;  %vm373_vm0 = vcmp.eq.s32.totalorder %v235_v1, 0  ;;  %vm390_vm1 = vcmp.ge.s32.totalorder %v235_v1, 1  ;;  %229 = vst.msk [vmem:[%s206_s29] sm:$0x3] %vm1090_vm2, %v927_v23  ;;  %s1123_s7 = scalar_lea.hbm %s1258_s1, %s1116_s30 }
  0x40   : > { %245 = vrot.lane.b32.xlu1 %v1078_v5, %s925_s6  ;;  %v1096_v22 = vsub.s32 %v302_v13, %v235_v1  ;;  %s475_s28 = sshll.u32 %s206_s29, 4  ;;  %s451_s15 = scalar_lea.sflag [#allocation5], %s1067_s11  ;;  %s1125_s28 = int_to_ptr.vmem [resolvable:$true] %s475_s28 }
  0x41   : > { %v379_v11 = vrot.slane %v374_v8, %v378_v2  ;;  %v383_v12 = vrot.slane %v374_v8, %v382_v3  ;;  %323 = vrot.lane.b32.xlu0 %v1078_v5, %s926_s24  ;;  %s779_s21 = scalar_lea.vmem %s1125_s28, 32  ;;  %p1271_p9 = scmp.ne.s32.totalorder %s1264_s25, 0 }
  0x42   : > { %v438_v28 = vrot.slane %v431_v21, %v1096_v22  ;;  %p780_p8 = scmp.ne.s32.totalorder %s1125_s28, %s779_s21  ;;  %s928_s23 = smov [#allocation6]  }
  0x43   : > { %v386_v14 = vsel %vm373_vm0, %v379_v11, %v371_v9  ;;  %v387_v15 = vsel %vm373_vm0, %v383_v12, %v372_v10  ;;  %s783_s22 = sshll.u32 %s928_s23, 4  ;;  %s784_s22 = int_to_ptr.vmem [resolvable:$false] %s783_s22 }
  0x44   : > { %v388_v16 = vsub.f32 %v1076_v4, %v386_v14  ;;  %v389_v17 = vsub.f32 %v1078_v5, %v387_v15  ;;  %v439_v31 = vcombine.high %v438_v28, %v438_v28  ;;  %p781_p11 = pnand %p780_p8, %p1271_p9  ;;  %s785_s6 = scalar_lea.vmem %s784_s22, 64 }
  0x45   : > { %p786_p6 = scmp.lt.s32.totalorder %s1125_s28, %s784_s22  ;;  %p787_p12 = scmp.lt.s32.totalorder %s785_s6, %s779_s21 }
  0x46   : > { %v392_v19 = vsel %vm390_vm1, %v388_v16, 0.0  ;;  %v393_v20 = vsel %vm390_vm1, %v389_v17, 0.0  ;;  %v446_v34 = vrot.slane %v439_v31, %v1096_v22  ;;  %v394_v44 = vld [vmem:[%s206_s29] sm:$0x3]  ;;  %p782_p13 = pneg %p781_p11 }
  0x47   : > { %v395_v24 = vmul.f32 %v392_v19, %v392_v19  ;;  %v396_v25 = vmul.f32 %v393_v20, %v393_v20  ;;  %p788_p2 = por %p787_p12, %p786_p6 }
  0x48   : > { %v447_v37 = vcombine.high %v446_v34, %v446_v34 }
  0x49   : > { %v397_v26 = vrot.slane %v395_v24, 4  ;;  %v403_v27 = vrot.slane %v396_v25, 4  ;;  %p789_p5 = pnand %p788_p2, %p782_p13 }
  0x4a   : > { %449 = vst.msk [vmem:[#allocation2] sm:$0x3] %vm1090_vm2, %v447_v37 }
  0x4b   : > { %v398_v29 = vadd.f32 %v397_v26, %v395_v24  ;;  %v404_v30 = vadd.f32 %v403_v27, %v396_v25 }
  0x4d   : > { %v399_v32 = vrot.slane %v398_v29, 2  ;;  %v405_v33 = vrot.slane %v404_v30, 2 }
  0x4f   : > { %v400_v35 = vadd.f32 %v399_v32, %v398_v29  ;;  %v406_v36 = vadd.f32 %v405_v33, %v404_v30 }
  0x51   : > { %v401_v38 = vrot.slane %v400_v35, 1  ;;  %v407_v39 = vrot.slane %v406_v36, 1 }
  0x53   : > { %v402_v40 = vadd.f32 %v401_v38, %v400_v35  ;;  %v408_v41 = vadd.f32 %v407_v39, %v406_v36 }
  0x55   : > { %v411_v42 = vcombine.low %v402_v40, %v408_v41 }
  0x57   : > { %v418_v43 = vrot.slane %v411_v42, %v1096_v22 }
  0x59   : > { %v425_v45 = vrot.slane %v418_v43, %v1096_v22 }
  0x5b   : > { %v427_v46 = vadd.f32 %v425_v45, %v394_v44 }
  0x5d   : > { %428 = vst.msk [vmem:[%s206_s29] sm:$0x3] %vm1090_vm2, %v427_v46 }
  0x5e   : > { %792 = shalt.err (!%p789_p5)
}
  0x5f   : > { %s793_s11 = scalar_lea.hbm %s1123_s7, 32  ;;  %s797_s29 = scalar_lea.hbm %s1258_s1, 192 }
  0x60   : > { %p794_p4 = scmp.ne.s32.totalorder %s1123_s7, %s793_s11  ;;  %p798_p0 = scmp.lt.u32.totalorder %s1123_s7, %s1258_s1 }
  0x61   : > { %p799_p1 = scmp.lt.u32.totalorder %s797_s29, %s793_s11  ;;  %p801_p8 = scmp.lt.u32.totalorder %s793_s11, %s1123_s7 }
  0x62   : > { %p795_p7 = pnand %p794_p4, %p1271_p9 }
  0x63   : > { %p800_p3 = por %p799_p1, %p798_p0 }
  0x64   : > { %p796_p10 = pneg %p795_p7 }
  0x65   : > { %p802_p11 = por %p801_p8, %p800_p3 }
  0x67   : > { %p803_p13 = pnand %p802_p11, %p796_p10 }
  0x69   : > { %806 = shalt.err (!%p803_p13)
}
  0x6a   : > { %674 = dma.vmem_to_hbm [thread:$0]  (%p1271_p9), %s1125_s28, 32, %s1123_s7, %s451_s15   ;;  %v237_v47 = vand.u32 127, %v225_v0  ;;  %v336_v36 = vld [vmem:[%s1098_s9] sm:$0x3]  ;;  %v282_v37 = vld [vmem:[%s1103_s10] sm:$0x3] }
  0x6b   : > { %s455_s28 = sand.u32 1, %s982_s18   ;;  %s489_s7 = sshll.u32 %s1098_s9, 4  ;;  %s1171_s7 = int_to_ptr.vmem [resolvable:$true] %s489_s7 }
  0x6c   : > { %v238_v48 = vadd.s32 128, %v237_v47  ;;  %v256_v51 = vand.u32 15, %v237_v47  ;;  %vm247_vm3 = vcmp.lt.s32.totalorder %v237_v47, 127  ;;  %vm325_vm4 = vcmp.lt.s32.totalorder %v237_v47, 112  ;;  %s503_s15 = sshll.u32 %s1103_s10, 4  ;;  %s1169_s22 = scalar_lea.hbm %s1259_s2, %s1116_s30  ;;  %s1179_s15 = int_to_ptr.vmem [resolvable:$true] %s503_s15 }
  0x6d   : > { %s1177_s11 = scalar_lea.hbm %s1260_s3, %s1116_s30  ;;  %s1187_s24 = scalar_lea.sflag [#allocation8], %s455_s28 }
  0x6e   : > { %v263_v52 = vand.u32 15, %v238_v48  ;;  %vm276_vm5 = vcmp.ne.s32.totalorder %v256_v51, 15  ;;  %vm331_vm7 = vcmp.lt.s32.totalorder %v238_v48, 240  ;;  %s807_s8 = scalar_lea.vmem %s1171_s7, 32  ;;  %s929_s29 = smov [#allocation7]  }
  0x6f   : > { %p808_p6 = scmp.ne.s32.totalorder %s1171_s7, %s807_s8  ;;  %s811_s4 = sshll.u32 %s929_s29, 4  ;;  %s812_s4 = int_to_ptr.vmem [resolvable:$false] %s811_s4 }
  0x70   : > { %vm277_vm6 = vcmp.ne.s32.totalorder %v263_v52, 15  ;;  %s813_s30 = scalar_lea.vmem %s812_s4, 64  ;;  %p814_p5 = scmp.lt.s32.totalorder %s1171_s7, %s812_s4 }
  0x71   : > { %p809_p12 = pnand %p808_p6, %p1271_p9  ;;  %p815_p4 = scmp.lt.s32.totalorder %s813_s30, %s807_s8 }
  0x73   : > { %p810_p2 = pneg %p809_p12  ;;  %p816_p7 = por %p815_p4, %p814_p5 }
  0x75   : > { %p817_p10 = pnand %p816_p7, %p810_p2 }
  0xae   : > { %v244_v49 = vpop.permute.xlu1 %243 }
  0xaf   : > { %v322_v50 = vpop.permute.xlu0 %321 }
  0xb2   : > { %v246_v53 = vpop.permute.xlu1 %245 }
  0xb3   : > { %v324_v54 = vpop.permute.xlu0 %323  ;;  %v248_v55 = vsel %vm247_vm3, %v244_v49, %v246_v53  ;;  %v249_v56 = vsel %vm247_vm3, %v246_v53, %v244_v49 }
  0xb4   : > { %v326_v57 = vsel %vm325_vm4, %v322_v50, %v324_v54  ;;  %v327_v58 = vsel %vm325_vm4, %v324_v54, %v322_v50  ;;  %v250_v59 = vsub.f32 %v248_v55, %v1076_v4  ;;  %v251_v60 = vsub.f32 %v249_v56, %v1078_v5 }
  0xb5   : > { %v328_v61 = vsub.f32 %v326_v57, %v1076_v4  ;;  %v329_v62 = vsub.f32 %v327_v58, %v1078_v5 }
  0xb6   : > { %v280_v63 = vsel %vm276_vm5, %v250_v59, 0.0  ;;  %v281_v0 = vsel %vm277_vm6, %v251_v60, 0.0 }
  0xb7   : > { %v335_v1 = vsel %vm331_vm7, %v329_v62, 0.0  ;;  %v337_v2 = vmul.f32 %v328_v61, %v328_v61  ;;  %v283_v3 = vmul.f32 %v280_v63, %v280_v63  ;;  %v284_v6 = vmul.f32 %v281_v0, %v281_v0 }
  0xb8   : > { %v338_v7 = vmul.f32 %v335_v1, %v335_v1 }
  0xb9   : > { %v339_v8 = vrot.slane %v337_v2, 4  ;;  %v285_v9 = vrot.slane %v283_v3, 4  ;;  %v291_v10 = vrot.slane %v284_v6, 4 }
  0xba   : > { %v345_v11 = vrot.slane %v338_v7, 4 }
  0xbb   : > { %v340_v12 = vadd.f32 %v339_v8, %v337_v2  ;;  %v286_v13 = vadd.f32 %v285_v9, %v283_v3  ;;  %v292_v14 = vadd.f32 %v291_v10, %v284_v6 }
  0xbc   : > { %v346_v15 = vadd.f32 %v345_v11, %v338_v7 }
  0xbd   : > { %v341_v16 = vrot.slane %v340_v12, 2  ;;  %v287_v17 = vrot.slane %v286_v13, 2  ;;  %v293_v4 = vrot.slane %v292_v14, 2 }
  0xbe   : > { %v347_v19 = vrot.slane %v346_v15, 2 }
  0xbf   : > { %v342_v5 = vadd.f32 %v341_v16, %v340_v12  ;;  %v288_v20 = vadd.f32 %v287_v17, %v286_v13  ;;  %v294_v21 = vadd.f32 %v293_v4, %v292_v14 }
  0xc0   : > { %v348_v23 = vadd.f32 %v347_v19, %v346_v15 }
  0xc1   : > { %v343_v24 = vrot.slane %v342_v5, 1  ;;  %v289_v25 = vrot.slane %v288_v20, 1  ;;  %v295_v26 = vrot.slane %v294_v21, 1 }
  0xc2   : > { %v349_v27 = vrot.slane %v348_v23, 1 }
  0xc3   : > { %v344_v28 = vadd.f32 %v343_v24, %v342_v5  ;;  %v290_v29 = vadd.f32 %v289_v25, %v288_v20  ;;  %v296_v30 = vadd.f32 %v295_v26, %v294_v21 }
  0xc4   : > { %v350_v31 = vadd.f32 %v349_v27, %v348_v23 }
  0xc5   : > { %v299_v32 = vcombine.low %v290_v29, %v296_v30 }
  0xc6   : > { %v353_v33 = vcombine.low %v344_v28, %v350_v31 }
  0xc7   : > { %v306_v34 = vrot.slane %v299_v32, %v1096_v22 }
  0xc8   : > { %v360_v35 = vrot.slane %v353_v33, %v1096_v22 }
  0xc9   : > { %v313_v38 = vrot.slane %v306_v34, %v1096_v22 }
  0xca   : > { %v367_v39 = vrot.slane %v360_v35, %v1096_v22 }
  0xcb   : > { %v315_v41 = vadd.f32 %v313_v38, %v282_v37 }
  0xcc   : > { %v369_v40 = vadd.f32 %v367_v39, %v336_v36 }
  0xcd   : > { %320 = vst.msk [vmem:[%s1103_s10] sm:$0x3] %vm1090_vm2, %v315_v41 }
  0xce   : > { %370 = vst.msk [vmem:[%s1098_s9] sm:$0x3] %vm1090_vm2, %v369_v40 }
  0xcf   : > { %820 = shalt.err (!%p817_p10)
}
  0xd0   : > { %s821_s9 = scalar_lea.hbm %s1169_s22, 32  ;;  %s825_s28 = scalar_lea.hbm %s1259_s2, 192 }
  0xd1   : > { %p822_p0 = scmp.ne.s32.totalorder %s1169_s22, %s821_s9  ;;  %p826_p8 = scmp.lt.u32.totalorder %s1169_s22, %s1259_s2 }
  0xd2   : > { %p827_p11 = scmp.lt.u32.totalorder %s825_s28, %s821_s9  ;;  %p829_p6 = scmp.lt.u32.totalorder %s821_s9, %s1169_s22 }
  0xd3   : > { %p823_p1 = pnand %p822_p0, %p1271_p9 }
  0xd4   : > { %p828_p13 = por %p827_p11, %p826_p8 }
  0xd5   : > { %p824_p3 = pneg %p823_p1 }
  0xd6   : > { %p830_p12 = por %p829_p6, %p828_p13 }
  0xd8   : > { %p831_p2 = pnand %p830_p12, %p824_p3 }
  0xda   : > { %834 = shalt.err (!%p831_p2)
}
  0xdb   : > { %675 = dma.vmem_to_hbm [thread:$0]  (%p1271_p9), %s1171_s7, 32, %s1169_s22, %s1187_s24  }
  0xdc   : > { %s835_s18 = scalar_lea.vmem %s1179_s15, 32  ;;  %s930_s6 = smov [#allocation9]  }
  0xdd   : > { %p836_p5 = scmp.ne.s32.totalorder %s1179_s15, %s835_s18  ;;  %s839_s8 = sshll.u32 %s930_s6, 4  ;;  %s840_s8 = int_to_ptr.vmem [resolvable:$false] %s839_s8 }
  0xde   : > { %s841_s29 = scalar_lea.vmem %s840_s8, 64  ;;  %p842_p10 = scmp.lt.s32.totalorder %s1179_s15, %s840_s8 }
  0xdf   : > { %p837_p4 = pnand %p836_p5, %p1271_p9  ;;  %p843_p0 = scmp.lt.s32.totalorder %s841_s29, %s835_s18 }
  0xe1   : > { %p838_p7 = pneg %p837_p4  ;;  %p844_p1 = por %p843_p0, %p842_p10 }
  0xe3   : > { %p845_p3 = pnand %p844_p1, %p838_p7 }
  0xe5   : > { %848 = shalt.err (!%p845_p3)
}
  0xe6   : > { %s849_s7 = scalar_lea.hbm %s1177_s11, 32  ;;  %s853_s30 = scalar_lea.hbm %s1260_s3, 192 }
  0xe7   : > { %p850_p8 = scmp.ne.s32.totalorder %s1177_s11, %s849_s7  ;;  %p854_p6 = scmp.lt.u32.totalorder %s1177_s11, %s1260_s3 }
  0xe8   : > { %p855_p12 = scmp.lt.u32.totalorder %s853_s30, %s849_s7  ;;  %p857_p5 = scmp.lt.u32.totalorder %s849_s7, %s1177_s11 }
  0xe9   : > { %p851_p11 = pnand %p850_p8, %p1271_p9 }
  0xea   : > { %p856_p2 = por %p855_p12, %p854_p6 }
  0xeb   : > { %p852_p13 = pneg %p851_p11 }
  0xec   : > { %p858_p4 = por %p857_p5, %p856_p2 }
  0xee   : > { %p859_p7 = pnand %p858_p4, %p852_p13 }
  0xf0   : > { %862 = shalt.err (!%p859_p7)
}
  0xf1   : > { %676 = dma.vmem_to_hbm [thread:$0]  (%p1271_p9), %s1179_s15, 32, %s1177_s11, %s1187_s24  }
  0xf2 PF: > { %p695_p10 = scmp.ge.s32.totalorder %s921_s17, 2  ;;  %s515_s5 = sand.u32 1, %s901_s12  }
  0xf3   : > { %p1272_p0 = scmp.ne.s32.totalorder %s1265_s27, 0  ;;  %s516_s28 = scalar_lea.sflag [#allocation5], %s515_s5 }
  0xf5   : > { %p685_p1 = pnand %p695_p10, %p1272_p0 }
  0xf7   : > { %892 = dma.done.wait (!%p685_p1), %s516_s28, 32  }
  0xf8   : > { %894 = vsyncadd (!%p685_p1), %s516_s28, 4294967264  ;;  %s524_s21 = sand.u32 1, %s646_s19  }
  0xf9   : > { %s525_s23 = scalar_lea.sflag [#allocation8], %s524_s21 }
  0xfa   : > { %896 = dma.done.wait (!%p685_p1), %s525_s23, 64  }
  0xfb   : > { %898 = vsyncadd (!%p685_p1), %s525_s23, 4294967232  ;;  %s23_s17 = sadd.s32 1, %s921_s17   ;;  %s1273_s12 = smov %s905_s13 }
  0xfc   : > { %p20_p9 = scmp.ge.s32.totalorder %s23_s17, 8   ;;  %s1274_s13 = smov %s909_s14 }
  0xfd   : > { %s1275_s14 = smov %s1013_s26  ;;  %s1276_s15 = smov %s917_s16 }
  0xfe   : > { %s1277_s16 = smov %s1279_s20  ;;  %22 = sbr.rel (!%p20_p9) target bundleno = 8 (0x8), region = 105 }
 0x105   :  { %539 = vsyncpa [#allocation4], 1 }
 0x106   :  { %541 = vsyncpa [#allocation4 + $0x1], 1 }
 0x107   :  { %542 = vsyncpa [#allocation5], 1 }
 0x108   :  { %544 = vsyncpa [#allocation5 + $0x1], 1 }
 0x109   :  { %545 = vsyncpa [#allocation8], 1 }
 0x10a   :  { %547 = vsyncpa [#allocation8 + $0x1], 1 }

</bundles_post_ra>
